<compile_context>
chip_gen: v5e
topology: v5e:2x2
jax: 0.10.0
libtpu: 0.0.40
codegen_flags: <defaults>
</compile_context>

<pallas_src>
import jax
import jax.numpy as jnp
from jax.experimental import pallas as pl
from jax.experimental.pallas import tpu as pltpu

LANE = 128


def ca_scale_kernel(x_ref, att_ref, o_ref):
    """o = x * att, with att broadcast across the lane (spatial) axis.

    x_ref  : (TR, TL)  rows = flattened (batch, channel), lanes = spatial
    att_ref: (TR, 1)   per-(batch, channel) attention scalar
    o_ref  : (TR, TL)
    """
    o_ref[...] = (x_ref[...] * att_ref[...]).astype(o_ref.dtype)


def _physical_vmem_bytes():
    """Per-TensorCore VMEM capacity; conservative fallback if unqueryable."""
    try:
        return int(pltpu.get_tpu_info().vmem_capacity_bytes)
    except Exception:
        return 64 * 1024 * 1024  # v7x per-TC size (smallest of v5e/v6e/v7x)


def _pick_tiles(R, HW, dtype_bytes, per_buf_bytes, sub):
    """Pick a (rows, lanes) tile for the streaming multiply.

    per_buf_bytes budgets ONE tile; the kernel keeps ~4 live tiles
    (double-buffered input + output). Tiles obey the (8,128)-or-full-dim rule:
    row tiles are multiples of `sub` (or == R), lane tiles are multiples of
    128 (or == HW). Ragged edges are over-covered and masked by Pallas.
    """
    # Lane tile: prefer the full spatial extent (lane-dense stores); otherwise
    # the largest multiple of 128 that keeps `sub` rows within budget.
    max_lanes = per_buf_bytes // (sub * dtype_bytes)
    if max_lanes >= HW:
        tl = HW                                          # full dim (always legal)
    else:
        tl = max(LANE, (max_lanes // LANE) * LANE)       # multiple of 128
    if tl > HW:
        tl = HW

    # Row tile: as many rows as fit in the budget with this lane width.
    tr = per_buf_bytes // (max(tl, 1) * dtype_bytes)
    tr = max(sub, (tr // sub) * sub)
    if tr > R:
        tr = R                                           # full dim (always legal)

    # Expose enough parallel grid steps for dual-TensorCore chips (v7x),
    # without shrinking tiles below one vreg row-group / lane-group.
    def n_steps(tr_, tl_):
        return pl.cdiv(R, tr_) * pl.cdiv(HW, tl_)

    while n_steps(tr, tl) < 4:
        if tr > sub:
            new_tr = max(sub, ((tr // 2) // sub) * sub)
            if new_tr == tr:
                break
            tr = new_tr
        elif tl >= 2 * LANE:
            new_tl = max(LANE, ((tl // 2) // LANE) * LANE)
            if new_tl == tl:
                break
            tl = new_tl
        else:
            break
    return int(tr), int(tl)


def ca_layer(x, d, w1, w2):
    """x: (B, C, H, W), d: (B, C_in), w1: (C_mid, C_in), w2: (C_out, C_mid)."""
    B, C, H, W = x.shape
    C_mid, C_in = w1.shape
    C_out = w2.shape[0]
    assert C_out == C, "attention channels (C_out) must match feature-map channels"
    assert d.shape == (B, C_in)
    assert w2.shape == (C_out, C_mid)

    # ---- attention branch: tiny matvecs, done once in plain JAX (hoisted) ----
    hidden = jnp.einsum("bi,mi->bm", d, w1)                     # (B, C_mid)
    hidden = jnp.where(hidden >= 0, hidden, 0.1 * hidden)       # LeakyReLU(0.1)
    att = jax.nn.sigmoid(jnp.einsum("bm,om->bo", hidden, w2))   # (B, C)
    att = att.astype(x.dtype).reshape(B * C, 1)                 # (B*C, 1), x dtype

    # ---- streaming multiply over a (rows, lanes) = (B*C, H*W) view ----
    R = B * C
    HW = H * W
    x2 = x.reshape(R, HW)                                       # free (contiguous)

    dtype_bytes = jnp.dtype(x.dtype).itemsize
    sub = max(8, 32 // dtype_bytes)                             # 8 f32 / 16 bf16 / 32 i8

    phys_vmem = _physical_vmem_bytes()
    total_budget = min(phys_vmem // 2, 48 * 1024 * 1024)        # all live buffers
    tr, tl = _pick_tiles(R, HW, dtype_bytes, total_budget // 4, sub)

    grid = (pl.cdiv(R, tr), pl.cdiv(HW, tl))                    # edge blocks masked

    cost = pl.CostEstimate(
        flops=R * HW,
        transcendentals=0,
        bytes_accessed=2 * R * HW * dtype_bytes + R * dtype_bytes,
    )

    out2 = pl.pallas_call(
        ca_scale_kernel,
        out_shape=jax.ShapeDtypeStruct((R, HW), x.dtype),
        grid_spec=pltpu.PrefetchScalarGridSpec(
            num_scalar_prefetch=0,
            grid=grid,
            in_specs=[
                pl.BlockSpec((tr, tl), lambda r, s: (r, s)),    # feature tile
                pl.BlockSpec((tr, 1), lambda r, s: (r, 0)),     # per-row attention
            ],
            out_specs=pl.BlockSpec((tr, tl), lambda r, s: (r, s)),
        ),
        compiler_params=pltpu.CompilerParams(
            dimension_semantics=("parallel", "parallel"),
            vmem_limit_bytes=int(min(phys_vmem, total_budget + 16 * 1024 * 1024)),
        ),
        cost_estimate=cost,
    )(x2, att)

    return out2.reshape(B, C, H, W)


def _reference(x, d, w1, w2):
    hidden = jnp.einsum("mi,bi->bm", w1, d)
    hidden = jnp.where(hidden >= 0, hidden, 0.1 * hidden)
    att = jax.nn.sigmoid(jnp.einsum("om,bm->bo", w2, hidden)).astype(x.dtype)
    return x * att[:, :, None, None]


if __name__ == "__main__":
    key = jax.random.PRNGKey(0)

    def run_case(B, C, H, W, reduction, subkey):
        C_mid = max(1, C // reduction)
        kx, kd, k1, k2 = jax.random.split(subkey, 4)
        x = jax.random.normal(kx, (B, C, H, W), dtype=jnp.float32)
        d = jax.random.normal(kd, (B, C), dtype=jnp.float32)
        w1 = jax.random.normal(k1, (C_mid, C), dtype=jnp.float32) * 0.1
        w2 = jax.random.normal(k2, (C, C_mid), dtype=jnp.float32) * 0.1

        out = jax.block_until_ready(ca_layer(x, d, w1, w2))
        ref = _reference(x, d, w1, w2)
        assert out.shape == (B, C, H, W)
        assert jnp.allclose(out, ref, atol=1e-5, rtol=1e-5), "mismatch vs reference"

    k_a, k_b, k_c = jax.random.split(key, 3)
    # Lane-dense spatial extent (HW = 256), rows multiple of 8.
    run_case(B=2, C=32, H=16, W=16, reduction=8, subkey=k_a)
    # Ragged spatial extent (HW = 144): exercises masked lane edge blocks.
    run_case(B=2, C=32, H=12, W=12, reduction=8, subkey=k_b)
    # Ragged row count (B*C = 12): exercises masked row edge blocks.
    run_case(B=3, C=4, H=16, W=16, reduction=2, subkey=k_c)

    print("KERNEL_OK")
</pallas_src>

<mosaic_0001>
module attributes {stable_mosaic.version = 11 : i64} {
  func.func @ca_scale_kernel(%arg0: i32, %arg1: i32, %arg2: memref<16x256xf32, #tpu.memory_space<vmem>>, %arg3: memref<16x1xf32, #tpu.memory_space<vmem>>, %arg4: memref<16x256xf32, #tpu.memory_space<vmem>>) attributes {dimension_semantics = [#tpu.dimension_semantics<parallel>, #tpu.dimension_semantics<parallel>], iteration_bounds = array<i64: 4, 1>, scalar_prefetch = 0 : i64, scratch_operands = 0 : i64, tpu.core_type = #tpu.core_type<tc>, window_params = [{transform_indices = @transform_0, window_bounds = array<i64: 16, 256>}, {transform_indices = @transform_1, window_bounds = array<i64: 16, 1>}, {transform_indices = @transform_2, window_bounds = array<i64: 16, 256>}]} {
    %c0 = arith.constant 0 : index
    %c0_0 = arith.constant 0 : index
    %0 = vector.load %arg2[%c0, %c0_0] : memref<16x256xf32, #tpu.memory_space<vmem>>, vector<16x256xf32>
    %c0_1 = arith.constant 0 : index
    %c0_2 = arith.constant 0 : index
    %1 = vector.load %arg3[%c0_1, %c0_2] : memref<16x1xf32, #tpu.memory_space<vmem>>, vector<16x1xf32>
    %2 = vector.broadcast %1 : vector<16x1xf32> to vector<16x256xf32>
    %3 = arith.mulf %0, %2 : vector<16x256xf32>
    %c0_3 = arith.constant 0 : index
    %c0_4 = arith.constant 0 : index
    %4 = vector.load %arg4[%c0_3, %c0_4] : memref<16x256xf32, #tpu.memory_space<vmem>>, vector<16x256xf32>
    tpu.vector_store %arg4[%c0_3, %c0_4], %3 {strides = array<i32>} : memref<16x256xf32, #tpu.memory_space<vmem>>, vector<16x256xf32>,
    return
  }
  func.func @transform_0(%arg0: i32, %arg1: i32) -> (i32, i32) {
    %c0_i32 = arith.constant 0 : i32
    return %arg0, %arg1 : i32, i32
  }
  func.func @transform_1(%arg0: i32, %arg1: i32) -> (i32, i32) {
    %c0_i32 = arith.constant 0 : i32
    %c0_i32_0 = arith.constant 0 : i32
    return %arg0, %c0_i32 : i32, i32
  }
  func.func @transform_2(%arg0: i32, %arg1: i32) -> (i32, i32) {
    %c0_i32 = arith.constant 0 : i32
    return %arg0, %arg1 : i32, i32
  }
}

</mosaic_0001>

<bundles_post_ra>
// kernel: tpu_custom_call.1
= control target key start
LH: loop header
LB: loop body
LE: loop exit
PB: predicated region body
PF: predicated region fallthrough
CT: control target
= control target key end

     0   :  { %7 = vsyncpa [#allocation3], 0  ;;  %s698_s0 = inlined_call_operand.hbm [shape: f32[64,256], index: 0, kind: input, shape index: {}]   ;;  %s699_s1 = inlined_call_operand.vmem [shape: f32[64,1], index: 1, kind: input, shape index: {}]   ;;  %s700_s2 = inlined_call_operand.hbm [shape: f32[64,256], index: 2, kind: output, shape index: {}]  }
   0x1   :  { %9 = vsyncpa [#allocation3 + $0x1], 0 }
   0x2   :  { %10 = vsyncpa [#allocation4], 0 }
   0x3   :  { %12 = vsyncpa [#allocation4 + $0x1], 0  ;;  %s576_s9 = smov 0   ;;  %s578_s10 = smov 0  }
   0x4   :  { %s580_s11 = smov 0   ;;  %s582_s12 = smov 0  }
   0x5   :  { %s584_s13 = smov 0   ;;  %s586_s14 = smov 0  }
   0x6 LB: > { %s351_s15 = sadd.s32 4294967295, %s554_s14   ;;  %s352_s16 = sadd.s32 4294967294, %s554_s14   ;;  %s554_s14 = sphi %s586_s14, %s18_s14   ;;  %s550_s13 = sphi %s584_s13, %s709_s13   ;;  %s546_s12 = sphi %s582_s12, %s708_s12   ;;  %s542_s11 = sphi %s580_s11, %s707_s11   ;;  %s538_s10 = sphi %s578_s10, %s706_s10   ;;  %s534_s9 = sphi %s576_s9, %s705_s9  }
   0x7   : > { %s30_s17 = sadd.s32 1, %s550_s13  ;;  %s39_s18 = sadd.s32 1, %s542_s11 }
   0x8   : > { %p32_p0 = scmp.ge.s32.totalorder %s30_s17, 4  ;;  %p46_p1 = scmp.ne.s32.totalorder %s542_s11, %s538_s10 }
   0x9   : > { %p47_p2 = scmp.eq.s32.totalorder %s554_s14, 0  ;;  %p52_p3 = scmp.ne.s32.totalorder %s538_s10, %s534_s9 }
   0xa   : > { %s711_s17 = smov (%p32_p0, %s30_s17), 0  ;;  %p53_p5 = scmp.eq.s32.totalorder %s351_s15, 0 }
   0xb   : > { %p617_p4 = por %p47_p2, %p46_p1  ;;  %s34_s20 = ssub.s32 %s550_s13, %s711_s17 }
   0xc   : > { %p104_p6 = scmp.eq.s32.totalorder %s351_s15, 3  ;;  %p37_p7 = scmp.eq.s32.totalorder %s34_s20, 0 }
   0xd   : > { %p623_p8 = por %p53_p5, %p52_p3  ;;  %p110_p10 = scmp.eq.s32.totalorder %s352_s16, 3 }
   0xe   : > { %p627_p9 = por %p104_p6, %p46_p1  ;;  %p386_p12 = scmp.lt.s32.totalorder %s554_s14, 4 }
   0xf   : > { %s632_s23 = scalar_select %p37_p7, %s542_s11, %s39_s18  }
  0x10   : > { %p634_p11 = por %p110_p10, %p52_p3  ;;  %s130_s25 = sand.u32 1, %s542_s11  }
  0x11   : > { %s355_s26 = sshll.u32 %s130_s25, 5  ;;  %s371_s27 = sshll.u32 %s550_s13, 5 }
  0x12   : > { %s142_s30 = scalar_lea.hbm %s698_s0, %s371_s27  ;;  %s134_s3 = scalar_lea.vmem [#allocation2], %s355_s26 }
  0x13   : > { %s145_s4 = sshll.u32 %s134_s3, 4  ;;  %s143_s5 = sshll.u32 %s142_s30, 4  ;;  %s146_s4 = int_to_ptr.vmem [resolvable:$true] %s145_s4  ;;  %s144_s5 = int_to_ptr.hbm [resolvable:$true] %s143_s5 }
  0x14   : > { %p379_p13 = pnand %p386_p12, %p617_p4  ;;  %p359_p0 = scmp.ge.s32.totalorder %s554_s14, 1 }
  0x15   : > { %s131_s6 = scalar_lea.sflag [#allocation3], %s130_s25  ;;  %s556_s7 = smov 256  }
  0x16   : > { %s557_s8 = smov 16   ;;  %p162_p1 = scmp.lt.s32.totalorder %s554_s14, 5 }
  0x17   : > { %381 = dma.hbm_to_vmem [thread:$0]  (!%p379_p13), %s144_s5, 512, %s146_s4, %s131_s6, %s556_s7, %s556_s7, %s557_s8  }
  0x18   : > { %p163_p2 = pnand %p359_p0, %p162_p1 }
  0x19   : > { %s649_s15 = sand.u32 (!%p163_p2), 1, %s538_s10  }
  0x1a   : > { %166 = sbr.rel (%p163_p2) target bundleno = 169 (0xa9), region = 28  ;;  %s360_s16 = sshll.u32 (!%p163_p2), %s649_s15, 5 }
  0x1b   : > { %s169_s18 = scalar_lea.sflag (!%p163_p2), [#allocation3], %s649_s15  ;;  %s172_s20 = scalar_lea.vmem (!%p163_p2), [#allocation2], %s360_s16 }
  0x1f   : > { %525 = dma.done.wait (%p623_p8), %s169_s18, 512  }
  0x20   : > { %527 = vsyncadd (%p623_p8), %s169_s18, 4294966784  ;;  %s362_s19 = sshll.u32 %s546_s12, 1  ;;  %v558_v0 = vmov 0   ;;  %v209_v3 = vld [vmem:[%s172_s20] sm:$0xff]  ;;  %v210_v4 = vld [vmem:[%s172_s20 + $0x8] sm:$0xff]  ;;  %s373_s21 = sshll.u32 %s546_s12, 5 }
  0x21   : > { %441 = vset.pattern.permute.xlu0 %v558_v0  ;;  %p202_p3 = scmp.lt.s32.totalorder %s362_s19, 7  ;;  %s198_s29 = scalar_lea.vmem [#allocation5], %s360_s16  ;;  %v211_v8 = vld [vmem:[%s172_s20 + $0x10] sm:$0xff]  ;;  %v212_v9 = vld [vmem:[%s172_s20 + $0x18] sm:$0xff] }
  0x22   : > { %s248_s4 = scalar_lea.hbm %s700_s2, %s373_s21  ;;  %s249_s5 = sshll.u32 %s198_s29, 4  ;;  %s250_s5 = int_to_ptr.vmem [resolvable:$true] %s249_s5 }
  0x23   : > { %s713_s19 = smov (!%p202_p3, %s362_s19), 7  ;;  %s251_s6 = sshll.u32 %s248_s4, 4  ;;  %s252_s6 = int_to_ptr.hbm [resolvable:$true] %s251_s6 }
  0x24   : > { %s363_s25 = sshll.u32 %s713_s19, 3  ;;  %s234_s12 = scalar_lea.sflag [#allocation4], %s649_s15 }
  0x25   : > { %s205_s28 = scalar_lea.vmem %s699_s1, %s363_s25  ;;  %s486_s7 = sshra.s32 %s252_s6, 4  ;;  %s487_s7 = int_to_ptr.hbm [resolvable:$true] %s486_s7 }
  0x26   : > { %v213_v1 = vld [vmem:[%s205_s28] sm:$0xff]  ;;  %v214_v2 = vld [vmem:[%s205_s28 + $0x8] sm:$0xff]  ;;  %s488_s8 = scalar_lea.hbm %s487_s7, 32  ;;  %s492_s20 = scalar_lea.hbm %s700_s2, 128 }
  0x27   : > { %217 = vperm.xlu0 %441, %v213_v1   ;;  %p489_p4 = scmp.ne.s32.totalorder %s487_s7, %s488_s8  ;;  %p493_p7 = scmp.lt.s32.totalorder %s487_s7, %s700_s2 }
  0x28   : > { %p494_p8 = scmp.lt.s32.totalorder %s492_s20, %s488_s8 }
  0x29   : > { %p490_p5 = pnand %p489_p4, %p627_p9 }
  0x2a   : > { %p495_p10 = por %p494_p8, %p493_p7 }
  0x2b   : > { %p491_p6 = pneg %p490_p5 }
  0x2d   : > { %p496_p12 = pnand %p495_p10, %p491_p6 }
  0x2f   : > { %222 = vperm.xlu0 %441, %v214_v2  }
  0x99   : > { %v218_v5 = vpop.permute.xlu0 %217 }
  0x9a   : > { %v225_v6 = vmul.f32 %v218_v5, %v209_v3  ;;  %v226_v7 = vmul.f32 %v218_v5, %v210_v4 }
  0x9c   : > { %229 = vst [vmem:[%s198_s29] sm:$0xff] %v225_v6 }
  0x9d   : > { %230 = vst [vmem:[%s198_s29 + $0x8] sm:$0xff] %v226_v7 }
  0xa1   : > { %v223_v10 = vpop.permute.xlu0 %222 }
  0xa2   : > { %v227_v11 = vmul.f32 %v223_v10, %v211_v8  ;;  %v228_v12 = vmul.f32 %v223_v10, %v212_v9 }
  0xa4   : > { %231 = vst [vmem:[%s198_s29 + $0x10] sm:$0xff] %v227_v11 }
  0xa5   : > { %232 = vst [vmem:[%s198_s29 + $0x18] sm:$0xff] %v228_v12 }
  0xa6   : > { %499 = shalt.err (!%p496_p12)
}
  0xa7   : > { %s559_s15 = smov 256   ;;  %s560_s26 = smov 16  }
  0xa8   : > { %376 = dma.vmem_to_hbm [thread:$0]  (%p627_p9), %s250_s5, 512, %s252_s6, %s234_s12, %s559_s15, %s559_s15, %s560_s26  }
  0xa9 PF: > { %p387_p13 = scmp.ge.s32.totalorder %s554_s14, 2  ;;  %s266_s27 = sand.u32 1, %s534_s9  }
  0xaa   : > { %s267_s28 = scalar_lea.sflag [#allocation4], %s266_s27 }
  0xab   : > { %p383_p0 = pnand %p387_p13, %p634_p11 }
  0xad   : > { %p384_p1 = pneg %p383_p0 }
  0xaf   : > { %529 = dma.done.wait (%p384_p1), %s267_s28, 512  }
  0xb0   : > { %531 = vsyncadd (%p384_p1), %s267_s28, 4294966784  ;;  %s18_s14 = sadd.s32 1, %s554_s14   ;;  %s705_s9 = smov %s538_s10 }
  0xb1   : > { %p15_p2 = scmp.ge.s32.totalorder %s18_s14, 6   ;;  %s706_s10 = smov %s542_s11 }
  0xb2   : > { %s707_s11 = smov %s632_s23  ;;  %s708_s12 = smov %s550_s13 }
  0xb3   : > { %s709_s13 = smov %s711_s17  ;;  %17 = sbr.rel (!%p15_p2) target bundleno = 6 (0x6), region = 76 }
  0xb8   :  { %273 = vsyncpa [#allocation3], 1 }
  0xb9   :  { %275 = vsyncpa [#allocation3 + $0x1], 1 }
  0xba   :  { %276 = vsyncpa [#allocation4], 1 }
  0xbb   :  { %278 = vsyncpa [#allocation4 + $0x1], 1 }

</bundles_post_ra>
